<compile_context>
chip_gen: v6e
topology: v6e:2x2x1
jax: 0.10.0
libtpu: 0.0.40
codegen_flags: <defaults>
</compile_context>

<pallas_src>
import jax
import jax.numpy as jnp
from jax.experimental import pallas as pl
from jax.experimental.pallas import tpu as pltpu

EPS = 1e-4
LANES = 128
MAX_BLOCK_BYTES = 4 * 1024 * 1024       # per-buffer block target (~4 MiB)
VMEM_HEADROOM_BYTES = 8 * 1024 * 1024   # slack for compiler-internal scratch
MIN_ROWS_PER_STEP = 512                 # don't split below ~256 KiB f32 blocks
MIN_GRID_STEPS = 4                      # >=2 steps per v7x TensorCore


def _fusion_kernel(w_ref, *refs):
    # w_ref: SMEM (in_nodes,) pre-normalized (relu'd + sum-normalized) weights
    # refs:  in_nodes VMEM input tiles (block_r, 128), then the output tile
    x_refs = refs[:-1]
    o_ref = refs[-1]
    acc = w_ref[0] * x_refs[0][...].astype(jnp.float32)
    for k in range(1, len(x_refs)):  # unrolled: in_nodes is a small static constant
        acc = acc + w_ref[k] * x_refs[k][...].astype(jnp.float32)
    o_ref[...] = acc.astype(o_ref.dtype)


def fast_normalized_fusion(weight, *xs):
    """JAX/Pallas equivalent of FastNormalizedFusion.forward(*xs)."""
    in_nodes = int(weight.shape[0])
    if len(xs) != in_nodes:
        raise RuntimeError(
            "Expected to have {} input nodes, but have {}.".format(in_nodes, len(xs))
        )
    orig_shape = xs[0].shape
    dtype = xs[0].dtype
    itemsize = jnp.dtype(dtype).itemsize
    # Native packed tiling: (8,128) f32, (16,128) bf16, (32,128) int8/fp8.
    sublanes = {4: 8, 2: 16, 1: 32}.get(itemsize, 8)

    total = 1
    for d in orig_shape:
        total *= int(d)

    # Hoisted weight normalization: K scalars, done once in f32.
    w = jnp.maximum(weight.astype(jnp.float32), 0.0)
    w_norm = w / (jnp.sum(w) + jnp.float32(EPS))

    # Lane-dense slab (rows, 128). Only 128-alignment is required; the
    # pad/slice copies are taken only on the rare misaligned path.
    rows = -(-total // LANES)
    padded_total = rows * LANES
    pad = padded_total - total

    def to_slab(x):
        flat = x.reshape(-1)
        if pad:
            # Rare path (total % 128 != 0): one extra HBM pass per input.
            flat = jnp.pad(flat, (0, pad))
        return flat.reshape(rows, LANES)

    slabs = [to_slab(x) for x in xs]

    # VMEM budget from actual chip capacity (64 MiB/TC v7x, 128 MiB v5e/v6e).
    try:
        vmem_cap = int(pltpu.get_tpu_info().vmem_capacity_bytes)
    except Exception:
        vmem_cap = 64 * 1024 * 1024  # conservative fallback
    vmem_limit = min(64 * 1024 * 1024, (vmem_cap * 3) // 4)
    budget = max(4 * 1024 * 1024, vmem_limit - VMEM_HEADROOM_BYTES)

    row_bytes = LANES * itemsize
    max_rows = max(sublanes, MAX_BLOCK_BYTES // row_bytes)
    # 2*(K inputs + 1 output) double-buffered blocks must fit the budget.
    cap_rows = max(sublanes, budget // (2 * (in_nodes + 1) * row_bytes))

    if rows <= sublanes:
        block_r = rows  # block equals full array dim for tiny inputs
    else:
        block_r = min(max_rows, cap_rows, rows)
        block_r = max(sublanes, (block_r // sublanes) * sublanes)
        # Keep >=MIN_GRID_STEPS grid steps when the array is large enough that
        # splitting still leaves big blocks (pipeline + megacore utilization).
        if rows >= MIN_GRID_STEPS * MIN_ROWS_PER_STEP:
            split_cap = max(
                sublanes, (rows // MIN_GRID_STEPS // sublanes) * sublanes
            )
            block_r = min(block_r, split_cap)

    grid = (-(-rows // block_r),)

    cost = pl.CostEstimate(
        flops=(2 * in_nodes - 1) * padded_total,
        transcendentals=0,
        bytes_accessed=(in_nodes + 1) * padded_total * itemsize,
    )

    out = pl.pallas_call(
        _fusion_kernel,
        out_shape=jax.ShapeDtypeStruct((rows, LANES), dtype),
        grid_spec=pltpu.PrefetchScalarGridSpec(
            num_scalar_prefetch=1,  # w_norm -> SMEM
            grid=grid,
            in_specs=[
                pl.BlockSpec((block_r, LANES), lambda i, w: (i, 0))
                for _ in range(in_nodes)
            ],
            out_specs=pl.BlockSpec((block_r, LANES), lambda i, w: (i, 0)),
        ),
        compiler_params=pltpu.CompilerParams(
            dimension_semantics=("parallel",),
            vmem_limit_bytes=vmem_limit,
        ),
        cost_estimate=cost,
    )(w_norm, *slabs)

    out_flat = out.reshape(-1)
    if pad:
        out_flat = out_flat[:total]  # rare path only
    return out_flat.reshape(orig_shape)


def fast_normalized_fusion_ref(weight, *xs):
    w = jnp.maximum(weight.astype(jnp.float32), 0.0)
    acc = sum(x.astype(jnp.float32) * w[k] for k, x in enumerate(xs))
    return (acc / (jnp.sum(w) + EPS)).astype(xs[0].dtype)


if __name__ == "__main__":
    in_nodes = 3
    shape = (2, 4, 16, 16)  # NCHW, 2048 elements -> (16, 128) lane-dense slab

    key = jax.random.PRNGKey(0)
    keys = jax.random.split(key, in_nodes + 1)
    xs = [jax.random.normal(keys[i], shape, dtype=jnp.float32) for i in range(in_nodes)]
    # Module initializes weight = torch.ones(in_nodes); perturb deterministically
    # (including one negative entry) to exercise the relu path.
    weight = jnp.ones((in_nodes,), jnp.float32) + jnp.array([0.5, -2.0, 0.25], jnp.float32)

    out = fast_normalized_fusion(weight, *xs)
    jax.block_until_ready(out)

    ref = fast_normalized_fusion_ref(weight, *xs)
    assert out.shape == shape and out.dtype == jnp.float32
    assert jnp.allclose(out, ref, atol=1e-5, rtol=1e-5), "mismatch vs reference"
    print("KERNEL_OK")
</pallas_src>

<mosaic_0001>
module attributes {stable_mosaic.version = 11 : i64} {
  func.func @_fusion_kernel(%arg0: i32, %arg1: memref<3xf32, #tpu.memory_space<smem>>, %arg2: memref<16x128xf32, #tpu.memory_space<vmem>>, %arg3: memref<16x128xf32, #tpu.memory_space<vmem>>, %arg4: memref<16x128xf32, #tpu.memory_space<vmem>>, %arg5: memref<16x128xf32, #tpu.memory_space<vmem>>) attributes {dimension_semantics = [#tpu.dimension_semantics<parallel>], iteration_bounds = array<i64: 1>, scalar_prefetch = 1 : i64, scratch_operands = 0 : i64, tpu.core_type = #tpu.core_type<tc>, window_params = [{transform_indices = @transform_0, window_bounds = array<i64: 16, 128>}, {transform_indices = @transform_1, window_bounds = array<i64: 16, 128>}, {transform_indices = @transform_2, window_bounds = array<i64: 16, 128>}, {transform_indices = @transform_3, window_bounds = array<i64: 16, 128>}]} {
    %c0 = arith.constant 0 : index
    %0 = memref.load %arg1[%c0] : memref<3xf32, #tpu.memory_space<smem>>
    %c0_0 = arith.constant 0 : index
    %c0_1 = arith.constant 0 : index
    %1 = vector.load %arg2[%c0_0, %c0_1] : memref<16x128xf32, #tpu.memory_space<vmem>>, vector<16x128xf32>
    %2 = vector.broadcast %0 : f32 to vector<16x128xf32>
    %3 = arith.mulf %2, %1 : vector<16x128xf32>
    %c1 = arith.constant 1 : index
    %4 = memref.load %arg1[%c1] : memref<3xf32, #tpu.memory_space<smem>>
    %c0_2 = arith.constant 0 : index
    %c0_3 = arith.constant 0 : index
    %5 = vector.load %arg3[%c0_2, %c0_3] : memref<16x128xf32, #tpu.memory_space<vmem>>, vector<16x128xf32>
    %6 = vector.broadcast %4 : f32 to vector<16x128xf32>
    %7 = arith.mulf %6, %5 : vector<16x128xf32>
    %8 = arith.addf %3, %7 : vector<16x128xf32>
    %c2 = arith.constant 2 : index
    %9 = memref.load %arg1[%c2] : memref<3xf32, #tpu.memory_space<smem>>
    %c0_4 = arith.constant 0 : index
    %c0_5 = arith.constant 0 : index
    %10 = vector.load %arg4[%c0_4, %c0_5] : memref<16x128xf32, #tpu.memory_space<vmem>>, vector<16x128xf32>
    %11 = vector.broadcast %9 : f32 to vector<16x128xf32>
    %12 = arith.mulf %11, %10 : vector<16x128xf32>
    %13 = arith.addf %8, %12 : vector<16x128xf32>
    %c0_6 = arith.constant 0 : index
    %c0_7 = arith.constant 0 : index
    %14 = vector.load %arg5[%c0_6, %c0_7] : memref<16x128xf32, #tpu.memory_space<vmem>>, vector<16x128xf32>
    tpu.vector_store %arg5[%c0_6, %c0_7], %13 {strides = array<i32>} : memref<16x128xf32, #tpu.memory_space<vmem>>, vector<16x128xf32>,
    return
  }
  func.func @transform_0(%arg0: i32, %arg1: memref<3xf32, #tpu.memory_space<smem>>) -> (i32, i32) {
    %c0_i32 = arith.constant 0 : i32
    %c0_i32_0 = arith.constant 0 : i32
    return %arg0, %c0_i32 : i32, i32
  }
  func.func @transform_1(%arg0: i32, %arg1: memref<3xf32, #tpu.memory_space<smem>>) -> (i32, i32) {
    %c0_i32 = arith.constant 0 : i32
    %c0_i32_0 = arith.constant 0 : i32
    return %arg0, %c0_i32 : i32, i32
  }
  func.func @transform_2(%arg0: i32, %arg1: memref<3xf32, #tpu.memory_space<smem>>) -> (i32, i32) {
    %c0_i32 = arith.constant 0 : i32
    %c0_i32_0 = arith.constant 0 : i32
    return %arg0, %c0_i32 : i32, i32
  }
  func.func @transform_3(%arg0: i32, %arg1: memref<3xf32, #tpu.memory_space<smem>>) -> (i32, i32) {
    %c0_i32 = arith.constant 0 : i32
    %c0_i32_0 = arith.constant 0 : i32
    return %arg0, %c0_i32 : i32, i32
  }
}

</mosaic_0001>

<bundles_post_ra>
// kernel: tpu_custom_call.1
= control target key start
LH: loop header
LB: loop body
LE: loop exit
PB: predicated region body
PF: predicated region fallthrough
CT: control target
= control target key end

     0   :  { %s208_s15 = smov [#allocation3]   ;;  %s267_s0 = inlined_call_operand.hbm [shape: f32[3], index: 0, kind: input, shape index: {}]   ;;  %s268_s1 = inlined_call_operand.hbm [shape: f32[16,128], index: 1, kind: input, shape index: {}]   ;;  %s269_s2 = inlined_call_operand.hbm [shape: f32[16,128], index: 2, kind: input, shape index: {}]   ;;  %s270_s3 = inlined_call_operand.hbm [shape: f32[16,128], index: 3, kind: input, shape index: {}]   ;;  %s271_s4 = inlined_call_operand.hbm [shape: f32[16,128], index: 4, kind: output, shape index: {}]  }
   0x1   :  { %10 = dma.hbm_to_smem %s267_s0, 16, %s208_s15, [#allocation2] }
   0x2   :  { %200 = dma.done.wait [#allocation2], 16 }
   0x3   :  { %201 = vsyncadd [#allocation2], 4294967280 }
   0x4   :  { %12 = sfence }
   0x5   :  { %13 = vsyncpa [#allocation5], 0 }
   0x6   :  { %14 = vsyncpa [#allocation8], 0 }
   0x7   :  { %15 = vsyncpa [#allocation6], 0  ;;  %s209_s18 = smov [#allocation7]   ;;  %s210_s20 = smov [#allocation4]  }
   0x8   :  { %s33_s19 = sshll.u32 %s209_s18, 4  ;;  %s21_s21 = sshll.u32 %s210_s20, 4  ;;  %s34_s19 = int_to_ptr.vmem [resolvable:$true] %s33_s19  ;;  %s22_s21 = int_to_ptr.vmem [resolvable:$true] %s21_s21 }
   0x9   :  { %s128_s22 = scalar_lea.vmem %s34_s19, 256  ;;  %p133_p1 = scmp.lt.s32.totalorder %s34_s19, %s34_s19 }
   0xa   :  { %p129_p0 = scmp.ne.s32.totalorder %s34_s19, %s128_s22  ;;  %p134_p2 = scmp.lt.s32.totalorder %s128_s22, %s128_s22 }
   0xc   :  { %p135_p3 = por %p134_p2, %p133_p1 }
   0xe   :  { %p136_p4 = pnand %p135_p3, %p129_p0 }
  0x10   :  { %139 = shalt.err (!%p136_p4)
}
  0x11   :  { %s211_s0 = smov 128   ;;  %s212_s23 = smov 8  }
  0x12   :  { %39 = dma.hbm_to_vmem [thread:$0]  %s269_s2, 256, %s34_s19, [#allocation8], %s211_s0, %s211_s0, %s212_s23  }
  0x13   :  { %s148_s26 = scalar_lea.vmem %s22_s21, 256  ;;  %p153_p6 = scmp.lt.s32.totalorder %s22_s21, %s22_s21 }
  0x14   :  { %p149_p5 = scmp.ne.s32.totalorder %s22_s21, %s148_s26  ;;  %p154_p7 = scmp.lt.s32.totalorder %s148_s26, %s148_s26 }
  0x16   :  { %p155_p8 = por %p154_p7, %p153_p6 }
  0x18   :  { %p156_p9 = pnand %p155_p8, %p149_p5 }
  0x1a   :  { %159 = shalt.err (!%p156_p9)
}
  0x1b   :  { %27 = dma.hbm_to_vmem [thread:$0]  %s268_s1, 256, %s22_s21, [#allocation5], %s211_s0, %s211_s0, %s212_s23  }
  0x1c   :  { %s213_s29 = smov [#allocation9]  }
  0x1d   :  { %s45_s30 = sshll.u32 %s213_s29, 4  ;;  %s46_s30 = int_to_ptr.vmem [resolvable:$true] %s45_s30 }
  0x1e   :  { %s168_s5 = scalar_lea.vmem %s46_s30, 256  ;;  %p173_p11 = scmp.lt.s32.totalorder %s46_s30, %s46_s30 }
  0x1f   :  { %p169_p10 = scmp.ne.s32.totalorder %s46_s30, %s168_s5  ;;  %p174_p12 = scmp.lt.s32.totalorder %s168_s5, %s168_s5 }
  0x21   :  { %p175_p13 = por %p174_p12, %p173_p11 }
  0x23   :  { %p176_p0 = pnand %p175_p13, %p169_p10 }
  0x25   :  { %179 = shalt.err (!%p176_p0)
}
  0x26   :  { %51 = dma.hbm_to_vmem [thread:$0]  %s270_s3, 256, %s46_s30, [#allocation8], %s211_s0, %s211_s0, %s212_s23  }
  0x27   :  { %202 = dma.done.wait [#allocation5], 256  }
  0x28   :  { %203 = vsyncadd [#allocation5], 4294967040 }
  0x29   :  { %204 = dma.done.wait [#allocation8], 512  }
  0x2a   :  { %205 = vsyncadd [#allocation8], 4294966784  ;;  %s61_s1 = sld [smem:[#allocation3]]  ;;  %v62_v0 = vld [vmem:[#allocation4] sm:$0xff]  ;;  %v68_v2 = vld [vmem:[#allocation7] sm:$0xff]  ;;  %s214_s3 = smov [#allocation10]  }
  0x2b   :  { %s103_s7 = sld [smem:[#allocation3 + $0x1]]  ;;  %v76_v3 = vld [vmem:[#allocation9] sm:$0xff]  ;;  %v63_v6 = vld [vmem:[#allocation4 + $0x8] sm:$0xff]  ;;  %v69_v7 = vld [vmem:[#allocation7 + $0x8] sm:$0xff]  ;;  %s90_s9 = sshll.u32 %s214_s3, 4  ;;  %s91_s9 = int_to_ptr.vmem [resolvable:$true] %s90_s9 }
  0x2c   :  { %s104_s8 = sld [smem:[#allocation3 + $0x2]]  ;;  %v77_v8 = vld [vmem:[#allocation9 + $0x8] sm:$0xff]  ;;  %s180_s10 = scalar_lea.vmem %s91_s9, 256 }
  0x2d   :  { %p181_p1 = scmp.ne.s32.totalorder %s91_s9, %s180_s10  ;;  %p185_p2 = scmp.lt.s32.totalorder %s91_s9, %s91_s9 }
  0x2e   :  { %p186_p3 = scmp.lt.s32.totalorder %s180_s10, %s180_s10 }
  0x30   :  { %v64_v1 = vstv %s61_s1  ;;  %p187_p4 = por %p186_p3, %p185_p2 }
  0x31   :  { %v65_v4 = vmul.f32 %v64_v1, %v62_v0  ;;  %v70_v5 = vstv %s103_s7  ;;  %v66_v11 = vmul.f32 %v64_v1, %v63_v6 }
  0x32   :  { %v71_v9 = vmul.f32 %v70_v5, %v68_v2  ;;  %v78_v10 = vstv %s104_s8  ;;  %v72_v12 = vmul.f32 %v70_v5, %v69_v7  ;;  %p188_p5 = pnand %p187_p4, %p181_p1 }
  0x33   :  { %v79_v13 = vmul.f32 %v78_v10, %v76_v3  ;;  %v80_v14 = vmul.f32 %v78_v10, %v77_v8 }
  0x34   :  { %v73_v15 = vadd.f32 %v71_v9, %v65_v4  ;;  %v74_v16 = vadd.f32 %v72_v12, %v66_v11 }
  0x36   :  { %v81_v17 = vadd.f32 %v79_v13, %v73_v15  ;;  %v82_v18 = vadd.f32 %v80_v14, %v74_v16 }
  0x38   :  { %83 = vst [vmem:[#allocation10] sm:$0xff] %v81_v17  ;;  %84 = vst [vmem:[#allocation10 + $0x8] sm:$0xff] %v82_v18 }
  0x39   :  { %191 = shalt.err (!%p188_p5)
}
  0x3a   :  { %96 = dma.vmem_to_hbm [thread:$0]  %s91_s9, 256, %s271_s4, [#allocation6], %s211_s0, %s211_s0, %s212_s23  }
  0x3b   :  { %206 = dma.done.wait [#allocation6], 256  }
  0x3c   :  { %207 = vsyncadd [#allocation6], 4294967040 }
  0x3d   :  { %100 = vsyncpa [#allocation5], 1 }
  0x3e   :  { %101 = vsyncpa [#allocation8], 1 }
  0x3f   :  { %102 = vsyncpa [#allocation6], 1 }

</bundles_post_ra>
